<compile_context>
chip_gen: v7x
topology: tpu7x:2x2x1
jax: 0.10.0
libtpu: 0.0.40
codegen_flags: <defaults>
</compile_context>

<pallas_src>
import functools

import jax
import jax.numpy as jnp
import numpy as np
from jax.experimental import pallas as pl
from jax.experimental.pallas import tpu as pltpu

RNN_HIDDEN = 128


def _round_up(x, m):
    return ((x + m - 1) // m) * m


def _cdiv(a, b):
    return (a + b - 1) // b


# ---------------------------------------------------------------------------
# Pallas kernel: fc1 + ReLU + GRUCell + fc3 for one row block.
# ---------------------------------------------------------------------------
def _globalq_kernel(x_ref, h_ref,
                    w1_ref, b1_ref,
                    wg_ref, bg_ref,
                    w3_ref, b3_ref,
                    q_ref, hout_ref,
                    ah_ref, *, fuse_gates):
    H = RNN_HIDDEN
    x = x_ref[...]                       # (rows, D_pad)   bf16
    h = h_ref[...]                       # (rows, H)       bf16

    # fc1 + ReLU (f32 accumulate on the MXU).
    z1 = jnp.dot(x, w1_ref[...], preferred_element_type=jnp.float32) + b1_ref[...]
    a = jnp.maximum(z1, 0.0).astype(jnp.bfloat16)

    # Stage [a | h] in a persistent VMEM scratch (no in-kernel concatenate).
    ah_ref[:, :H] = a
    ah_ref[:, H:] = h

    def sigmoid(v):
        # tanh-based sigmoid: single EUP transcendental, no divide.
        return 0.5 * (jnp.tanh(0.5 * v) + 1.0)

    if fuse_gates:
        # Single (rows, 2H) x (2H, 4H) matmul -> [rz | i_n | h_n].
        g = jnp.dot(ah_ref[...], wg_ref[...],
                    preferred_element_type=jnp.float32) + bg_ref[...]
        r = sigmoid(g[:, :H])
        z = sigmoid(g[:, H:2 * H])
        i_n = g[:, 2 * H:3 * H]
        h_n = g[:, 3 * H:]
    else:
        # v5e path: 128-deep MXU already full at K=128; skip zero-block passes.
        rz = jnp.dot(ah_ref[...], wg_ref[:, :2 * H],
                     preferred_element_type=jnp.float32) + bg_ref[:, :2 * H]
        r = sigmoid(rz[:, :H])
        z = sigmoid(rz[:, H:])
        i_n = jnp.dot(a, wg_ref[:H, 2 * H:3 * H],
                      preferred_element_type=jnp.float32) + bg_ref[:, 2 * H:3 * H]
        h_n = jnp.dot(h, wg_ref[H:, 3 * H:],
                      preferred_element_type=jnp.float32) + bg_ref[:, 3 * H:]

    n = jnp.tanh(i_n + r * h_n)
    h_new = (1.0 - z) * n + z * h.astype(jnp.float32)            # (rows, H) f32

    # fc3 into a lane-dense (rows, 128) padded bf16 output.
    q = jnp.dot(h_new.astype(jnp.bfloat16), w3_ref[...],
                preferred_element_type=jnp.float32) + b3_ref[...]

    q_ref[...] = q.astype(q_ref.dtype)
    hout_ref[...] = h_new.astype(hout_ref.dtype)


# ---------------------------------------------------------------------------
# One-time parameter preprocessing: fold duplicated state block into w1,
# build the fused (2H, 4H) GRU gate weight, pad fc3 to 128 lanes, cast to bf16.
# ---------------------------------------------------------------------------
def prepare_params(params, state_dim):
    H = RNN_HIDDEN
    bf = jnp.bfloat16

    # Fold duplicated state block of fc1: x = [state, state, actions, ids].
    w1 = params["w1"]
    w1_fold = jnp.concatenate(
        [w1[:state_dim] + w1[state_dim:2 * state_dim], w1[2 * state_dim:]], axis=0)
    d_fold = int(w1_fold.shape[0])
    d_pad = _round_up(d_fold, 128)
    w1_pad = jnp.pad(w1_fold, ((0, d_pad - d_fold), (0, 0)))

    # Fused gate weight: W_gru = [[w_ih[:, :2H], w_in, 0   ],
    #                             [w_hh[:, :2H], 0,    w_hn]]   (2H, 4H)
    w_ih, w_hh = params["w_ih"], params["w_hh"]
    b_ih, b_hh = params["b_ih"], params["b_hh"]
    zeros_hh = jnp.zeros((H, H), w_ih.dtype)
    top = jnp.concatenate([w_ih[:, :2 * H], w_ih[:, 2 * H:], zeros_hh], axis=1)
    bot = jnp.concatenate([w_hh[:, :2 * H], zeros_hh, w_hh[:, 2 * H:]], axis=1)
    w_gru = jnp.concatenate([top, bot], axis=0)                   # (2H, 4H)
    b_gru = jnp.concatenate(
        [b_ih[:, :2 * H] + b_hh[:, :2 * H], b_ih[:, 2 * H:], b_hh[:, 2 * H:]], axis=1)

    n_actions = int(params["w3"].shape[1])
    a_pad = _round_up(n_actions, 128)
    w3_pad = jnp.pad(params["w3"], ((0, 0), (0, a_pad - n_actions)))
    b3_pad = jnp.pad(params["b3"], ((0, 0), (0, a_pad - n_actions)))

    prep = {
        "w1": w1_pad.astype(bf), "b1": params["b1"].astype(jnp.float32),
        "w_gru": w_gru.astype(bf), "b_gru": b_gru.astype(jnp.float32),
        "w3": w3_pad.astype(bf), "b3": b3_pad.astype(jnp.float32),
    }
    cfg = {"state_dim": state_dim, "d_fold": d_fold, "d_pad": d_pad,
           "n_actions": n_actions, "n_actions_pad": a_pad}
    return prep, cfg


# ---------------------------------------------------------------------------
# Forward wrapper. x_folded: (N, d_pad) bf16 (from build_inputs_folded);
# h_bf16: persistent (N, H) bf16 hidden-state buffer (aliased in place).
# ---------------------------------------------------------------------------
def globalq_forward(x_folded, h_bf16, prep, cfg, batch_size, n_agents,
                    fuse_gates=True):
    H = RNN_HIDDEN
    N = batch_size * n_agents
    d_pad = cfg["d_pad"]
    n_actions, a_pad = cfg["n_actions"], cfg["n_actions_pad"]

    # Balanced row blocks: >= 2 grid steps for large N so v7x's 2 TensorCores
    # split evenly; capped at 1024 rows (per-step VMEM stays ~ a few MiB).
    block_rows = max(16, min(1024, _round_up(_cdiv(N, 2), 16)))
    n_pad = _round_up(N, block_rows)

    x, h = x_folded, h_bf16
    if n_pad != N:
        x = jnp.pad(x, ((0, n_pad - N), (0, 0)))
        h = jnp.pad(h, ((0, n_pad - N), (0, 0)))

    grid = (n_pad // block_rows,)
    row_spec = lambda cols: pl.BlockSpec((block_rows, cols), lambda i: (i, 0))
    full_spec = lambda r, c: pl.BlockSpec((r, c), lambda i: (0, 0))   # resident

    kernel = functools.partial(_globalq_kernel, fuse_gates=fuse_gates)

    q, h_out = pl.pallas_call(
        kernel,
        out_shape=(jax.ShapeDtypeStruct((n_pad, a_pad), jnp.bfloat16),
                   jax.ShapeDtypeStruct((n_pad, H), jnp.bfloat16)),
        grid=grid,
        in_specs=[
            row_spec(d_pad),              # x (folded, padded, bf16)
            row_spec(H),                  # h (bf16)
            full_spec(d_pad, H),          # w1
            full_spec(1, H),              # b1
            full_spec(2 * H, 4 * H),      # w_gru  [rz | i_n | h_n]
            full_spec(1, 4 * H),          # b_gru
            full_spec(H, a_pad),          # w3 (lane-padded)
            full_spec(1, a_pad),          # b3
        ],
        out_specs=(row_spec(a_pad), row_spec(H)),
        scratch_shapes=[pltpu.VMEM((block_rows, 2 * H), jnp.bfloat16)],
        input_output_aliases={1: 1},      # reuse h's HBM buffer for h_out
        compiler_params=pltpu.CompilerParams(
            dimension_semantics=("parallel",),
            vmem_limit_bytes=32 * 1024 * 1024),
    )(x, h,
      prep["w1"], prep["b1"],
      prep["w_gru"], prep["b_gru"],
      prep["w3"], prep["b3"])

    q = q[:N, :n_actions].astype(jnp.float32).reshape(batch_size, n_agents, n_actions)
    h_out = h_out[:N]                     # persistent bf16 (N, H) buffer
    return q, h_out


# ---------------------------------------------------------------------------
# Input builders (equivalent of PyTorch _build_inputs).
# ---------------------------------------------------------------------------
def _input_pieces(batch_state, batch_action, n_agents, n_actions):
    bs = batch_state.shape[0]
    state_f = batch_state.astype(jnp.float32)
    state_rep = jnp.broadcast_to(state_f[:, None, :],
                                 (bs, n_agents, state_f.shape[-1]))

    onehot = jax.nn.one_hot(batch_action, n_actions, dtype=jnp.float32)
    actions = onehot.reshape(bs, 1, -1)
    actions = jnp.broadcast_to(actions, (bs, n_agents, n_agents * n_actions))
    agent_mask = 1.0 - jnp.eye(n_agents, dtype=jnp.float32)
    agent_mask = jnp.repeat(agent_mask.reshape(-1, 1), n_actions, axis=1)
    agent_mask = agent_mask.reshape(n_agents, n_agents * n_actions)
    masked_actions = actions * agent_mask[None, :, :]

    agent_ids = jnp.broadcast_to(jnp.eye(n_agents, dtype=jnp.float32)[None],
                                 (bs, n_agents, n_agents))
    return state_rep, masked_actions, agent_ids


def build_inputs_folded(batch_state, batch_action, n_agents, n_actions, cfg):
    """Kernel-layout input: [state, masked_actions, ids, 0-pad] (N, d_pad) bf16.

    The duplicate state block of the PyTorch layout is folded into w1 (rows
    pre-summed), so the state is written only once and no extra HBM passes
    (concat / pad / cast) are needed in the forward wrapper.
    """
    bs = batch_state.shape[0]
    d_fold, d_pad = cfg["d_fold"], cfg["d_pad"]
    state_rep, masked_actions, agent_ids = _input_pieces(
        batch_state, batch_action, n_agents, n_actions)
    pad = jnp.zeros((bs, n_agents, d_pad - d_fold), jnp.float32)
    x = jnp.concatenate([state_rep, masked_actions, agent_ids, pad], axis=-1)
    return x.reshape(bs * n_agents, d_pad).astype(jnp.bfloat16)


def build_inputs_full(batch_state, batch_action, n_agents, n_actions):
    """Exact PyTorch layout [state, state, masked_actions, ids] (f32), for the reference."""
    state_rep, masked_actions, agent_ids = _input_pieces(
        batch_state, batch_action, n_agents, n_actions)
    return jnp.concatenate([state_rep, state_rep, masked_actions, agent_ids], axis=-1)


# ---------------------------------------------------------------------------
# Parameter init (PyTorch-style uniform). Weights stored as [in, out].
# ---------------------------------------------------------------------------
def init_params(key, input_shape, n_actions):
    H = RNN_HIDDEN
    ks = jax.random.split(key, 8)

    def unif(k, shape, bound):
        return jax.random.uniform(k, shape, jnp.float32, -bound, bound)

    b1v = 1.0 / np.sqrt(input_shape)
    bh = 1.0 / np.sqrt(H)
    return {
        "w1":   unif(ks[0], (input_shape, H), b1v),
        "b1":   unif(ks[1], (1, H), b1v),
        "w_ih": unif(ks[2], (H, 3 * H), bh),   # gate order [r | z | n]
        "b_ih": unif(ks[3], (1, 3 * H), bh),
        "w_hh": unif(ks[4], (H, 3 * H), bh),
        "b_hh": unif(ks[5], (1, 3 * H), bh),
        "w3":   unif(ks[6], (H, n_actions), bh),
        "b3":   unif(ks[7], (1, n_actions), bh),
    }


# Pure-JAX f32 reference with the ORIGINAL params (mirrors PyTorch forward).
def reference_forward(inputs_full, hidden_f32, params, batch_size, n_agents):
    H = RNN_HIDDEN
    N = batch_size * n_agents
    x = inputs_full.reshape(N, -1).astype(jnp.float32)
    h = hidden_f32.reshape(N, H).astype(jnp.float32)
    a = jnp.maximum(x @ params["w1"] + params["b1"], 0.0)
    gi = a @ params["w_ih"] + params["b_ih"]
    gh = h @ params["w_hh"] + params["b_hh"]
    r = jax.nn.sigmoid(gi[:, :H] + gh[:, :H])
    z = jax.nn.sigmoid(gi[:, H:2 * H] + gh[:, H:2 * H])
    n = jnp.tanh(gi[:, 2 * H:] + r * gh[:, 2 * H:])
    h_new = (1.0 - z) * n + z * h
    q = h_new @ params["w3"] + params["b3"]
    return (q.reshape(batch_size, n_agents, -1),
            h_new.reshape(batch_size, n_agents, -1))


# Pure-JAX mirror of the kernel's bf16/fused math (tight check).
def reference_forward_bf16(x_folded, h_bf16, prep, cfg, batch_size, n_agents):
    H = RNN_HIDDEN
    f32 = jnp.float32
    a = jnp.maximum(jnp.dot(x_folded, prep["w1"], preferred_element_type=f32)
                    + prep["b1"], 0.0).astype(jnp.bfloat16)
    ah = jnp.concatenate([a, h_bf16], axis=-1)
    g = jnp.dot(ah, prep["w_gru"], preferred_element_type=f32) + prep["b_gru"]
    r = jax.nn.sigmoid(g[:, :H])
    z = jax.nn.sigmoid(g[:, H:2 * H])
    n = jnp.tanh(g[:, 2 * H:3 * H] + r * g[:, 3 * H:])
    h_new = (1.0 - z) * n + z * h_bf16.astype(f32)
    q = jnp.dot(h_new.astype(jnp.bfloat16), prep["w3"],
                preferred_element_type=f32) + prep["b3"]
    q = q.astype(jnp.bfloat16).astype(f32)[:, :cfg["n_actions"]]
    return (q.reshape(batch_size, n_agents, -1),
            h_new.astype(jnp.bfloat16).astype(f32).reshape(batch_size, n_agents, -1))


if __name__ == "__main__":
    args = {"state_dim": 32, "action_dim": 8, "n_agents": 4, "batch_size": 2}
    state_dim = args["state_dim"]
    n_actions = args["action_dim"]
    n_agents = args["n_agents"]
    bs = args["batch_size"]
    input_shape = state_dim + state_dim + n_actions * n_agents + n_agents  # 100

    key = jax.random.PRNGKey(0)
    k_state, k_act, k_hid, k_par, k_state2, k_act2, k_hid2 = jax.random.split(key, 7)

    params = init_params(k_par, input_shape, n_actions)
    prep, cfg = prepare_params(params, state_dim)

    # Fused (256x512) gate matmul only where the MXU is 256-deep (v6e/v7x).
    device_kind = jax.devices()[0].device_kind.lower()
    fuse_gates = ("v6" in device_kind) or ("v7" in device_kind)

    fwd = jax.jit(functools.partial(globalq_forward, cfg=cfg, batch_size=bs,
                                    n_agents=n_agents, fuse_gates=fuse_gates))

    # --- small demo case (bs=2, n_agents=4, N=8) ---------------------------
    batch_state = jax.random.normal(k_state, (bs, state_dim), jnp.float32)
    batch_action = jax.random.randint(k_act, (bs, n_agents), 0, n_actions)
    hidden_f32 = jax.random.normal(k_hid, (bs * n_agents, RNN_HIDDEN), jnp.float32)
    h_bf16 = hidden_f32.astype(jnp.bfloat16)           # persistent bf16 h buffer

    x_folded = build_inputs_folded(batch_state, batch_action, n_agents, n_actions, cfg)
    inputs_full = build_inputs_full(batch_state, batch_action, n_agents, n_actions)
    assert inputs_full.shape == (bs, n_agents, input_shape)

    q, h_out = fwd(x_folded, h_bf16, prep)
    q = jax.block_until_ready(q)
    h_out = jax.block_until_ready(h_out)
    assert q.shape == (bs, n_agents, n_actions)
    assert h_out.shape == (bs * n_agents, RNN_HIDDEN)

    # Loose check vs exact f32 reference (fed the same bf16-quantized h),
    # plus a tight check vs a pure-JAX mirror of the kernel's bf16 math.
    q_ref, h_ref = reference_forward(inputs_full, h_bf16.astype(jnp.float32),
                                     params, bs, n_agents)
    h_np = np.asarray(h_out.astype(jnp.float32)).reshape(bs, n_agents, RNN_HIDDEN)
    np.testing.assert_allclose(np.asarray(q), np.asarray(q_ref), rtol=5e-2, atol=5e-2)
    np.testing.assert_allclose(h_np, np.asarray(h_ref), rtol=5e-2, atol=5e-2)

    q_m, h_m = reference_forward_bf16(x_folded, h_bf16, prep, cfg, bs, n_agents)
    np.testing.assert_allclose(np.asarray(q), np.asarray(q_m), rtol=1e-2, atol=1e-2)
    np.testing.assert_allclose(h_np, np.asarray(h_m), rtol=1e-2, atol=1e-2)

    # --- larger case: N=384 -> balanced 2-step grid (192+192) --------------
    bs2 = 96
    fwd2 = jax.jit(functools.partial(globalq_forward, cfg=cfg, batch_size=bs2,
                                     n_agents=n_agents, fuse_gates=fuse_gates))
    batch_state2 = jax.random.normal(k_state2, (bs2, state_dim), jnp.float32)
    batch_action2 = jax.random.randint(k_act2, (bs2, n_agents), 0, n_actions)
    hidden2_f32 = jax.random.normal(k_hid2, (bs2 * n_agents, RNN_HIDDEN), jnp.float32)
    h2_bf16 = hidden2_f32.astype(jnp.bfloat16)

    x2_folded = build_inputs_folded(batch_state2, batch_action2, n_agents, n_actions, cfg)
    inputs2_full = build_inputs_full(batch_state2, batch_action2, n_agents, n_actions)

    q2, h2_out = fwd2(x2_folded, h2_bf16, prep)
    q2 = jax.block_until_ready(q2)
    h2_out = jax.block_until_ready(h2_out)
    q2_ref, h2_ref = reference_forward(inputs2_full, h2_bf16.astype(jnp.float32),
                                       params, bs2, n_agents)
    h2_np = np.asarray(h2_out.astype(jnp.float32)).reshape(bs2, n_agents, RNN_HIDDEN)
    np.testing.assert_allclose(np.asarray(q2), np.asarray(q2_ref), rtol=5e-2, atol=5e-2)
    np.testing.assert_allclose(h2_np, np.asarray(h2_ref), rtol=5e-2, atol=5e-2)

    print("KERNEL_OK")
</pallas_src>

<mosaic_0001>
module attributes {stable_mosaic.version = 11 : i64} {
  func.func @_globalq_kernel(%arg0: i32, %arg1: memref<16x128xbf16, #tpu.memory_space<vmem>>, %arg2: memref<16x128xbf16, #tpu.memory_space<vmem>>, %arg3: memref<128x128xbf16, #tpu.memory_space<vmem>>, %arg4: memref<1x128xf32, #tpu.memory_space<vmem>>, %arg5: memref<256x512xbf16, #tpu.memory_space<vmem>>, %arg6: memref<1x512xf32, #tpu.memory_space<vmem>>, %arg7: memref<128x128xbf16, #tpu.memory_space<vmem>>, %arg8: memref<1x128xf32, #tpu.memory_space<vmem>>, %arg9: memref<16x128xbf16, #tpu.memory_space<vmem>>, %arg10: memref<16x128xbf16, #tpu.memory_space<vmem>>, %arg11: memref<16x256xbf16, #tpu.memory_space<vmem>>) attributes {dimension_semantics = [#tpu.dimension_semantics<parallel>], iteration_bounds = array<i64: 1>, scalar_prefetch = 0 : i64, scratch_operands = 1 : i64, tpu.core_type = #tpu.core_type<tc>, window_params = [{transform_indices = @transform_0, window_bounds = array<i64: 16, 128>}, {transform_indices = @transform_1, window_bounds = array<i64: 16, 128>}, {pipeline_mode = #tpu.pipeline_mode<synchronous>, transform_indices = @transform_2, window_bounds = array<i64: 128, 128>}, {pipeline_mode = #tpu.pipeline_mode<synchronous>, transform_indices = @transform_3, window_bounds = array<i64: 1, 128>}, {pipeline_mode = #tpu.pipeline_mode<synchronous>, transform_indices = @transform_4, window_bounds = array<i64: 256, 512>}, {pipeline_mode = #tpu.pipeline_mode<synchronous>, transform_indices = @transform_5, window_bounds = array<i64: 1, 512>}, {pipeline_mode = #tpu.pipeline_mode<synchronous>, transform_indices = @transform_6, window_bounds = array<i64: 128, 128>}, {pipeline_mode = #tpu.pipeline_mode<synchronous>, transform_indices = @transform_7, window_bounds = array<i64: 1, 128>}, {transform_indices = @transform_8, window_bounds = array<i64: 16, 128>}, {transform_indices = @transform_9, window_bounds = array<i64: 16, 128>}]} {
    %c0 = arith.constant 0 : index
    %c0_0 = arith.constant 0 : index
    %0 = vector.load %arg1[%c0, %c0_0] : memref<16x128xbf16, #tpu.memory_space<vmem>>, vector<16x128xbf16>
    %c0_1 = arith.constant 0 : index
    %c0_2 = arith.constant 0 : index
    %1 = vector.load %arg2[%c0_1, %c0_2] : memref<16x128xbf16, #tpu.memory_space<vmem>>, vector<16x128xbf16>
    %c0_3 = arith.constant 0 : index
    %c0_4 = arith.constant 0 : index
    %2 = vector.load %arg3[%c0_3, %c0_4] : memref<128x128xbf16, #tpu.memory_space<vmem>>, vector<128x128xbf16>
    %cst = arith.constant dense<0.000000e+00> : vector<16x128xf32>
    %3 = tpu.matmul %0, %2, %cst {dimension_numbers = #tpu.dot_dimension_numbers<[1], [0], [0], [1], [0, 0, 1, 1], [], []>} : vector<16x128xbf16>, vector<128x128xbf16>, vector<16x128xf32> -> vector<16x128xf32>
    %c0_5 = arith.constant 0 : index
    %c0_6 = arith.constant 0 : index
    %4 = vector.load %arg4[%c0_5, %c0_6] : memref<1x128xf32, #tpu.memory_space<vmem>>, vector<1x128xf32>
    %5 = vector.broadcast %4 : vector<1x128xf32> to vector<16x128xf32>
    %6 = arith.addf %3, %5 : vector<16x128xf32>
    %cst_7 = arith.constant 0.000000e+00 : f32
    %7 = vector.broadcast %cst_7 : f32 to vector<16x128xf32>
    %8 = arith.maximumf %6, %7 : vector<16x128xf32>
    %9 = arith.truncf %8 : vector<16x128xf32> to vector<16x128xbf16>
    %c0_8 = arith.constant 0 : index
    %c0_9 = arith.constant 0 : index
    %10 = vector.load %arg11[%c0_8, %c0_9] : memref<16x256xbf16, #tpu.memory_space<vmem>>, vector<16x128xbf16>
    tpu.vector_store %arg11[%c0_8, %c0_9], %9 {strides = array<i32>} : memref<16x256xbf16, #tpu.memory_space<vmem>>, vector<16x128xbf16>,
    %c0_10 = arith.constant 0 : index
    %c128 = arith.constant 128 : index
    %11 = vector.load %arg11[%c0_10, %c128] : memref<16x256xbf16, #tpu.memory_space<vmem>>, vector<16x128xbf16>
    tpu.vector_store %arg11[%c0_10, %c128], %1 {strides = array<i32>} : memref<16x256xbf16, #tpu.memory_space<vmem>>, vector<16x128xbf16>,
    %c0_11 = arith.constant 0 : index
    %c0_12 = arith.constant 0 : index
    %12 = vector.load %arg11[%c0_11, %c0_12] : memref<16x256xbf16, #tpu.memory_space<vmem>>, vector<16x256xbf16>
    %c0_13 = arith.constant 0 : index
    %c0_14 = arith.constant 0 : index
    %13 = vector.load %arg5[%c0_13, %c0_14] : memref<256x512xbf16, #tpu.memory_space<vmem>>, vector<256x256xbf16>
    %cst_15 = arith.constant dense<0.000000e+00> : vector<16x256xf32>
    %14 = tpu.matmul %12, %13, %cst_15 {dimension_numbers = #tpu.dot_dimension_numbers<[1], [0], [0], [1], [0, 0, 1, 1], [], []>} : vector<16x256xbf16>, vector<256x256xbf16>, vector<16x256xf32> -> vector<16x256xf32>
    %c0_16 = arith.constant 0 : index
    %c0_17 = arith.constant 0 : index
    %15 = vector.load %arg6[%c0_16, %c0_17] : memref<1x512xf32, #tpu.memory_space<vmem>>, vector<1x256xf32>
    %16 = vector.broadcast %15 : vector<1x256xf32> to vector<16x256xf32>
    %17 = arith.addf %14, %16 : vector<16x256xf32>
    %18 = vector.extract_strided_slice %17 {offsets = [0, 0], sizes = [16, 128], strides = [1, 1]} : vector<16x256xf32> to vector<16x128xf32>
    %cst_18 = arith.constant 5.000000e-01 : f32
    %19 = vector.broadcast %cst_18 : f32 to vector<16x128xf32>
    %20 = arith.mulf %19, %18 : vector<16x128xf32>
    %21 = math.tanh %20 : vector<16x128xf32>
    %cst_19 = arith.constant 1.000000e+00 : f32
    %22 = vector.broadcast %cst_19 : f32 to vector<16x128xf32>
    %23 = arith.addf %21, %22 : vector<16x128xf32>
    %cst_20 = arith.constant 5.000000e-01 : f32
    %24 = vector.broadcast %cst_20 : f32 to vector<16x128xf32>
    %25 = arith.mulf %24, %23 : vector<16x128xf32>
    %26 = vector.extract_strided_slice %17 {offsets = [0, 128], sizes = [16, 128], strides = [1, 1]} : vector<16x256xf32> to vector<16x128xf32>
    %cst_21 = arith.constant 5.000000e-01 : f32
    %27 = vector.broadcast %cst_21 : f32 to vector<16x128xf32>
    %28 = arith.mulf %27, %26 : vector<16x128xf32>
    %29 = math.tanh %28 : vector<16x128xf32>
    %cst_22 = arith.constant 1.000000e+00 : f32
    %30 = vector.broadcast %cst_22 : f32 to vector<16x128xf32>
    %31 = arith.addf %29, %30 : vector<16x128xf32>
    %cst_23 = arith.constant 5.000000e-01 : f32
    %32 = vector.broadcast %cst_23 : f32 to vector<16x128xf32>
    %33 = arith.mulf %32, %31 : vector<16x128xf32>
    %c0_24 = arith.constant 0 : index
    %c256 = arith.constant 256 : index
    %34 = vector.load %arg5[%c0_24, %c256] : memref<256x512xbf16, #tpu.memory_space<vmem>>, vector<128x128xbf16>
    %cst_25 = arith.constant dense<0.000000e+00> : vector<16x128xf32>
    %35 = tpu.matmul %9, %34, %cst_25 {dimension_numbers = #tpu.dot_dimension_numbers<[1], [0], [0], [1], [0, 0, 1, 1], [], []>} : vector<16x128xbf16>, vector<128x128xbf16>, vector<16x128xf32> -> vector<16x128xf32>
    %c0_26 = arith.constant 0 : index
    %c256_27 = arith.constant 256 : index
    %36 = vector.load %arg6[%c0_26, %c256_27] : memref<1x512xf32, #tpu.memory_space<vmem>>, vector<1x128xf32>
    %37 = vector.broadcast %36 : vector<1x128xf32> to vector<16x128xf32>
    %38 = arith.addf %35, %37 : vector<16x128xf32>
    %c128_28 = arith.constant 128 : index
    %c384 = arith.constant 384 : index
    %39 = vector.load %arg5[%c128_28, %c384] : memref<256x512xbf16, #tpu.memory_space<vmem>>, vector<128x128xbf16>
    %cst_29 = arith.constant dense<0.000000e+00> : vector<16x128xf32>
    %40 = tpu.matmul %1, %39, %cst_29 {dimension_numbers = #tpu.dot_dimension_numbers<[1], [0], [0], [1], [0, 0, 1, 1], [], []>} : vector<16x128xbf16>, vector<128x128xbf16>, vector<16x128xf32> -> vector<16x128xf32>
    %c0_30 = arith.constant 0 : index
    %c384_31 = arith.constant 384 : index
    %41 = vector.load %arg6[%c0_30, %c384_31] : memref<1x512xf32, #tpu.memory_space<vmem>>, vector<1x128xf32>
    %42 = vector.broadcast %41 : vector<1x128xf32> to vector<16x128xf32>
    %43 = arith.addf %40, %42 : vector<16x128xf32>
    %44 = arith.mulf %25, %43 : vector<16x128xf32>
    %45 = arith.addf %38, %44 : vector<16x128xf32>
    %46 = math.tanh %45 : vector<16x128xf32>
    %cst_32 = arith.constant 1.000000e+00 : f32
    %47 = vector.broadcast %cst_32 : f32 to vector<16x128xf32>
    %48 = arith.subf %47, %33 : vector<16x128xf32>
    %49 = arith.mulf %48, %46 : vector<16x128xf32>
    %50 = arith.extf %1 : vector<16x128xbf16> to vector<16x128xf32>
    %51 = arith.mulf %33, %50 : vector<16x128xf32>
    %52 = arith.addf %49, %51 : vector<16x128xf32>
    %53 = arith.truncf %52 : vector<16x128xf32> to vector<16x128xbf16>
    %c0_33 = arith.constant 0 : index
    %c0_34 = arith.constant 0 : index
    %54 = vector.load %arg7[%c0_33, %c0_34] : memref<128x128xbf16, #tpu.memory_space<vmem>>, vector<128x128xbf16>
    %cst_35 = arith.constant dense<0.000000e+00> : vector<16x128xf32>
    %55 = tpu.matmul %53, %54, %cst_35 {dimension_numbers = #tpu.dot_dimension_numbers<[1], [0], [0], [1], [0, 0, 1, 1], [], []>} : vector<16x128xbf16>, vector<128x128xbf16>, vector<16x128xf32> -> vector<16x128xf32>
    %c0_36 = arith.constant 0 : index
    %c0_37 = arith.constant 0 : index
    %56 = vector.load %arg8[%c0_36, %c0_37] : memref<1x128xf32, #tpu.memory_space<vmem>>, vector<1x128xf32>
    %57 = vector.broadcast %56 : vector<1x128xf32> to vector<16x128xf32>
    %58 = arith.addf %55, %57 : vector<16x128xf32>
    %59 = arith.truncf %58 : vector<16x128xf32> to vector<16x128xbf16>
    %c0_38 = arith.constant 0 : index
    %c0_39 = arith.constant 0 : index
    %60 = vector.load %arg9[%c0_38, %c0_39] : memref<16x128xbf16, #tpu.memory_space<vmem>>, vector<16x128xbf16>
    tpu.vector_store %arg9[%c0_38, %c0_39], %59 {strides = array<i32>} : memref<16x128xbf16, #tpu.memory_space<vmem>>, vector<16x128xbf16>,
    %61 = arith.truncf %52 : vector<16x128xf32> to vector<16x128xbf16>
    %c0_40 = arith.constant 0 : index
    %c0_41 = arith.constant 0 : index
    %62 = vector.load %arg10[%c0_40, %c0_41] : memref<16x128xbf16, #tpu.memory_space<vmem>>, vector<16x128xbf16>
    tpu.vector_store %arg10[%c0_40, %c0_41], %61 {strides = array<i32>} : memref<16x128xbf16, #tpu.memory_space<vmem>>, vector<16x128xbf16>,
    return
  }
  func.func @transform_0(%arg0: i32) -> (i32, i32) {
    %c0_i32 = arith.constant 0 : i32
    %c0_i32_0 = arith.constant 0 : i32
    return %arg0, %c0_i32 : i32, i32
  }
  func.func @transform_1(%arg0: i32) -> (i32, i32) {
    %c0_i32 = arith.constant 0 : i32
    %c0_i32_0 = arith.constant 0 : i32
    return %arg0, %c0_i32 : i32, i32
  }
  func.func @transform_2(%arg0: i32) -> (i32, i32) {
    %c0_i32 = arith.constant 0 : i32
    %c0_i32_0 = arith.constant 0 : i32
    %c0_i32_1 = arith.constant 0 : i32
    return %c0_i32, %c0_i32_0 : i32, i32
  }
  func.func @transform_3(%arg0: i32) -> (i32, i32) {
    %c0_i32 = arith.constant 0 : i32
    %c0_i32_0 = arith.constant 0 : i32
    %c0_i32_1 = arith.constant 0 : i32
    return %c0_i32, %c0_i32_0 : i32, i32
  }
  func.func @transform_4(%arg0: i32) -> (i32, i32) {
    %c0_i32 = arith.constant 0 : i32
    %c0_i32_0 = arith.constant 0 : i32
    %c0_i32_1 = arith.constant 0 : i32
    return %c0_i32, %c0_i32_0 : i32, i32
  }
  func.func @transform_5(%arg0: i32) -> (i32, i32) {
    %c0_i32 = arith.constant 0 : i32
    %c0_i32_0 = arith.constant 0 : i32
    %c0_i32_1 = arith.constant 0 : i32
    return %c0_i32, %c0_i32_0 : i32, i32
  }
  func.func @transform_6(%arg0: i32) -> (i32, i32) {
    %c0_i32 = arith.constant 0 : i32
    %c0_i32_0 = arith.constant 0 : i32
    %c0_i32_1 = arith.constant 0 : i32
    return %c0_i32, %c0_i32_0 : i32, i32
  }
  func.func @transform_7(%arg0: i32) -> (i32, i32) {
    %c0_i32 = arith.constant 0 : i32
    %c0_i32_0 = arith.constant 0 : i32
    %c0_i32_1 = arith.constant 0 : i32
    return %c0_i32, %c0_i32_0 : i32, i32
  }
  func.func @transform_8(%arg0: i32) -> (i32, i32) {
    %c0_i32 = arith.constant 0 : i32
    %c0_i32_0 = arith.constant 0 : i32
    return %arg0, %c0_i32 : i32, i32
  }
  func.func @transform_9(%arg0: i32) -> (i32, i32) {
    %c0_i32 = arith.constant 0 : i32
    %c0_i32_0 = arith.constant 0 : i32
    return %arg0, %c0_i32 : i32, i32
  }
}

</mosaic_0001>

<bundles_post_ra>
// kernel: globalq_forward.1
= control target key start
LH: loop header
LB: loop body
LE: loop exit
PB: predicated region body
PF: predicated region fallthrough
CT: control target
= control target key end

     0   :  { %15 = vsyncpa [#allocation4], 0  ;;  %s1399_s0 = inlined_call_operand.vmem [shape: bf16[16,128], index: 0, kind: input, shape index: {}]   ;;  %s1400_s1 = inlined_call_operand.vmem [shape: bf16[16,128], index: 1, kind: input, shape index: {}, may-alias: {1,9}]   ;;  %s1401_s2 = inlined_call_operand.hbm [shape: bf16[128,128], index: 2, kind: input, shape index: {}]   ;;  %s1402_s3 = inlined_call_operand.vmem [shape: f32[1,128], index: 3, kind: input, shape index: {}]   ;;  %s1403_s4 = inlined_call_operand.hbm [shape: bf16[256,512], index: 4, kind: input, shape index: {}]   ;;  %s1404_s5 = inlined_call_operand.vmem [shape: f32[1,512], index: 5, kind: input, shape index: {}]   ;;  %s1405_s6 = inlined_call_operand.hbm [shape: bf16[128,128], index: 6, kind: input, shape index: {}]   ;;  %s1406_s7 = inlined_call_operand.vmem [shape: f32[1,128], index: 7, kind: input, shape index: {}]   ;;  %s1407_s8 = inlined_call_operand.vmem [shape: bf16[16,128], index: 8, kind: output, shape index: {0}]   ;;  %s1408_s9 = inlined_call_operand.vmem [shape: bf16[16,128], index: 9, kind: output, shape index: {1}, may-alias: {1,9}]  }
   0x1   :  { %16 = vsyncpa [#allocation6], 0  ;;  %s1231_s30 = smov [#allocation5]   ;;  %s1161_s13 = scalar_lea.hbm %s1403_s4, 8192 }
   0x2   :  { %s40_s10 = sshll.u32 %s1231_s30, 4  ;;  %p1162_p0 = scmp.ne.s32.totalorder %s1403_s4, %s1161_s13  ;;  %s41_s10 = int_to_ptr.vmem [resolvable:$true] %s40_s10 }
   0x3   :  { %p1165_p1 = scmp.lt.u32.totalorder %s1161_s13, %s1403_s4 }
   0x5   :  { %p1167_p2 = pnand %p1165_p1, %p1162_p0 }
   0x7   :  { %1170 = shalt.err (!%p1167_p2)
}
   0x8   :  { %s1171_s18 = scalar_lea.vmem %s41_s10, 8192  ;;  %p1176_p4 = scmp.lt.s32.totalorder %s41_s10, %s41_s10 }
   0x9   :  { %p1172_p3 = scmp.ne.s32.totalorder %s41_s10, %s1171_s18  ;;  %p1177_p5 = scmp.lt.s32.totalorder %s1171_s18, %s1171_s18 }
   0xb   :  { %p1178_p6 = por %p1177_p5, %p1176_p4 }
   0xd   :  { %p1179_p7 = pnand %p1178_p6, %p1172_p3 }
   0xf   :  { %1182 = shalt.err (!%p1179_p7)
}
  0x10   :  { %s1232_s19 = smov 256   ;;  %s1233_s20 = smov 16  }
  0x11   :  { %46 = dma.hbm_to_vmem [thread:$0]  %s1403_s4, 8192, %s41_s10, [#allocation6], %s1232_s19, %s1232_s19, %s1233_s20  }
  0x12   :  { %s1234_s23 = smov [#allocation3]   ;;  %s1183_s27 = scalar_lea.hbm %s1401_s2, 1024 }
  0x13   :  { %s26_s24 = sshll.u32 %s1234_s23, 4  ;;  %p1184_p8 = scmp.ne.s32.totalorder %s1401_s2, %s1183_s27  ;;  %s27_s24 = int_to_ptr.vmem [resolvable:$true] %s26_s24 }
  0x14   :  { %p1187_p9 = scmp.lt.u32.totalorder %s1183_s27, %s1401_s2 }
  0x16   :  { %p1189_p10 = pnand %p1187_p9, %p1184_p8 }
  0x18   :  { %1192 = shalt.err (!%p1189_p10)
}
  0x19   :  { %s1193_s12 = scalar_lea.vmem %s27_s24, 1024  ;;  %p1198_p12 = scmp.lt.s32.totalorder %s27_s24, %s27_s24 }
  0x1a   :  { %p1194_p11 = scmp.ne.s32.totalorder %s27_s24, %s1193_s12  ;;  %p1199_p13 = scmp.lt.s32.totalorder %s1193_s12, %s1193_s12 }
  0x1c   :  { %p1200_p0 = por %p1199_p13, %p1198_p12 }
  0x1e   :  { %p1201_p1 = pnand %p1200_p0, %p1194_p11 }
  0x20   :  { %1204 = shalt.err (!%p1201_p1)
}
  0x21   :  { %s1235_s4 = smov 64   ;;  %s1236_s10 = smov 4  }
  0x22   :  { %32 = dma.hbm_to_vmem [thread:$0]  %s1401_s2, 1024, %s27_s24, [#allocation4], %s1235_s4, %s1235_s4, %s1236_s10  }
  0x23   :  { %s1237_s15 = smov [#allocation7]   ;;  %s1205_s19 = scalar_lea.hbm %s1405_s6, 1024 }
  0x24   :  { %s54_s16 = sshll.u32 %s1237_s15, 4  ;;  %p1206_p2 = scmp.ne.s32.totalorder %s1405_s6, %s1205_s19  ;;  %s55_s16 = int_to_ptr.vmem [resolvable:$true] %s54_s16 }
  0x25   :  { %p1209_p3 = scmp.lt.u32.totalorder %s1205_s19, %s1405_s6 }
  0x27   :  { %p1211_p4 = pnand %p1209_p3, %p1206_p2 }
  0x29   :  { %1214 = shalt.err (!%p1211_p4)
}
  0x2a   :  { %s1215_s25 = scalar_lea.vmem %s55_s16, 1024  ;;  %p1220_p6 = scmp.lt.s32.totalorder %s55_s16, %s55_s16 }
  0x2b   :  { %p1216_p5 = scmp.ne.s32.totalorder %s55_s16, %s1215_s25  ;;  %p1221_p7 = scmp.lt.s32.totalorder %s1215_s25, %s1215_s25 }
  0x2d   :  { %p1222_p8 = por %p1221_p7, %p1220_p6 }
  0x2f   :  { %p1223_p9 = pnand %p1222_p8, %p1216_p5 }
  0x31   :  { %1226 = shalt.err (!%p1223_p9)
}
  0x32   :  { %60 = dma.hbm_to_vmem [thread:$0]  %s1405_s6, 1024, %s55_s16, [#allocation6], %s1235_s4, %s1235_s4, %s1236_s10  }
  0x33   :  { %1227 = dma.done.wait [#allocation4], 1024  }
  0x34   :  { %1228 = vsyncadd [#allocation4], 4294966272 }
  0x35   :  { %1229 = dma.done.wait [#allocation6], 9216  }
  0x36   :  { %1230 = vsyncadd [#allocation6], 4294958080  ;;  %v1238_v0 = vmov 0.0   ;;  %vm1239_vm0 = vmmov 0   ;;  %v1066_v1 = vld [vmem:[#allocation3] sm:$0xff]   ;;  %v1067_v2 = vld [vmem:[#allocation3 + $0x8] sm:$0xff]  }
  0x37   :  { %977 = vmatprep.subr.bf16.mxu0 %v1238_v0  ;;  %993 = vmatprep.mubr.msk.bf16.mxu0 %vm1239_vm0, %v1238_v0  ;;  %v1068_v3 = vld [vmem:[#allocation3 + $0x10] sm:$0xff]   ;;  %v1069_v4 = vld [vmem:[#allocation3 + $0x18] sm:$0xff]   ;;  %v1070_v10 = vld [vmem:[#allocation3 + $0x20] sm:$0xff]  }
  0x38   :  { %978 = vmatpush3.bf16.msra.mxu0 %v1066_v1  ;;  %v1075_v5 = vld [vmem:[#allocation5 + $0x4] ss:$16 sps:$4 sm:$0xff]   ;;  %v1077_v6 = vld [vmem:[#allocation5] ss:$16 sps:$4 sm:$0xff]   ;;  %v1071_v13 = vld [vmem:[#allocation3 + $0x28] sm:$0xff]  }
  0x39   :  { %979 = vmatprep.subr.bf16.mxu0 %v1238_v0  ;;  %412 = vmatprep.subr.bf16.mxu1 %v1075_v5  ;;  %v1078_v7 = vld [vmem:[#allocation5 + $0x24] ss:$16 sps:$4 sm:$0xff]   ;;  %v1080_v8 = vld [vmem:[#allocation5 + $0x20] ss:$16 sps:$4 sm:$0xff]   ;;  %v1073_v19 = vld [vmem:[#allocation3 + $0x38] sm:$0xff]  }
  0x3a   :  { %413 = vmatpush1.bf16.msra.mxu1 %v1077_v6  ;;  %v1081_v9 = vld [vmem:[#allocation5 + $0x44] ss:$16 sps:$4 sm:$0xff]   ;;  %v1083_v11 = vld [vmem:[#allocation5 + $0x40] ss:$16 sps:$4 sm:$0xff]   ;;  %v1101_v23 = vld [vmem:[#allocation5 + $0x8] ss:$16 sps:$4 sm:$0xff]  }
  0x3b   :  { %414 = vmatprep.subr.bf16.mxu1 %v1078_v7  ;;  %v1084_v12 = vld [vmem:[#allocation5 + $0x64] ss:$16 sps:$4 sm:$0xff]   ;;  %v1086_v14 = vld [vmem:[#allocation5 + $0x60] ss:$16 sps:$4 sm:$0xff]   ;;  %v1105_v26 = vld [vmem:[#allocation5 + $0x28] ss:$16 sps:$4 sm:$0xff]  }
  0x3c   :  { %980 = vmatpush3.bf16.msra.mxu0 %v1067_v2  ;;  %v1087_v15 = vld [vmem:[#allocation5 + $0x84] ss:$16 sps:$4 sm:$0xff]   ;;  %v1089_v17 = vld [vmem:[#allocation5 + $0x80] ss:$16 sps:$4 sm:$0xff]   ;;  %v1109_v29 = vld [vmem:[#allocation5 + $0x48] ss:$16 sps:$4 sm:$0xff]  }
  0x3d   :  { %981 = vmatprep.subr.bf16.mxu0 %v1238_v0  ;;  %v1072_v16 = vld [vmem:[#allocation3 + $0x30] sm:$0xff]   ;;  %v1074_v20 = vld [vmem:[%s1399_s0] sm:$0xff]   ;;  %v1113_v32 = vld [vmem:[#allocation5 + $0x68] ss:$16 sps:$4 sm:$0xff]  }
  0x3e   :  { %415 = vmatpush1.bf16.msra.mxu1 %v1080_v8  ;;  %v1090_v18 = vld [vmem:[#allocation5 + $0xa4] ss:$16 sps:$4 sm:$0xff]   ;;  %v1092_v21 = vld [vmem:[#allocation5 + $0xa0] ss:$16 sps:$4 sm:$0xff]   ;;  %v1117_v35 = vld [vmem:[#allocation5 + $0x88] ss:$16 sps:$4 sm:$0xff]  }
  0x3f   :  { %416 = vmatprep.subr.bf16.mxu1 %v1081_v9  ;;  %v1093_v22 = vld [vmem:[#allocation5 + $0xc4] ss:$16 sps:$4 sm:$0xff]   ;;  %v1095_v24 = vld [vmem:[#allocation5 + $0xc0] ss:$16 sps:$4 sm:$0xff]   ;;  %v1121_v38 = vld [vmem:[#allocation5 + $0xa8] ss:$16 sps:$4 sm:$0xff]  }
  0x40   :  { %982 = vmatpush3.bf16.msra.mxu0 %v1068_v3  ;;  %v1096_v25 = vld [vmem:[#allocation5 + $0xe4] ss:$16 sps:$4 sm:$0xff]   ;;  %v1098_v27 = vld [vmem:[#allocation5 + $0xe0] ss:$16 sps:$4 sm:$0xff]   ;;  %v1125_v45 = vld [vmem:[#allocation5 + $0xc8] ss:$16 sps:$4 sm:$0xff]  }
  0x41   :  { %983 = vmatprep.subr.bf16.mxu0 %v1238_v0  ;;  %v1099_v28 = vld [vmem:[#allocation5 + $0x104] ss:$16 sps:$4 sm:$0xff]   ;;  %v1102_v30 = vld [vmem:[#allocation5 + $0x100] ss:$16 sps:$4 sm:$0xff]   ;;  %v1129_v48 = vld [vmem:[#allocation5 + $0xe8] ss:$16 sps:$4 sm:$0xff]  }
  0x42   :  { %417 = vmatpush1.bf16.msra.mxu1 %v1083_v11  ;;  %v1103_v31 = vld [vmem:[#allocation5 + $0x124] ss:$16 sps:$4 sm:$0xff]   ;;  %v1106_v33 = vld [vmem:[#allocation5 + $0x120] ss:$16 sps:$4 sm:$0xff]   ;;  %v1132_v60 = vld [vmem:[#allocation5 + $0x10c] ss:$16 sps:$4 sm:$0xff]  }
  0x43   :  { %418 = vmatprep.subr.bf16.mxu1 %v1084_v12  ;;  %v1107_v34 = vld [vmem:[#allocation5 + $0x144] ss:$16 sps:$4 sm:$0xff]   ;;  %v1110_v36 = vld [vmem:[#allocation5 + $0x140] ss:$16 sps:$4 sm:$0xff]   ;;  %v1133_v62 = vld [vmem:[#allocation5 + $0x12c] ss:$16 sps:$4 sm:$0xff]  }
  0x44   :  { %984 = vmatpush3.bf16.msra.mxu0 %v1069_v4  ;;  %v1111_v37 = vld [vmem:[#allocation5 + $0x164] ss:$16 sps:$4 sm:$0xff]   ;;  %v1114_v39 = vld [vmem:[#allocation5 + $0x160] ss:$16 sps:$4 sm:$0xff]   ;;  %v1134_v63 = vld [vmem:[#allocation5 + $0x14c] ss:$16 sps:$4 sm:$0xff]  }
  0x45   :  { %985 = vmatprep.subr.bf16.mxu0 %v1238_v0  ;;  %v1115_v40 = vld [vmem:[#allocation5 + $0x184] ss:$16 sps:$4 sm:$0xff]   ;;  %v1118_v41 = vld [vmem:[#allocation5 + $0x180] ss:$16 sps:$4 sm:$0xff]   ;;  %v1135_v1 = vld [vmem:[#allocation5 + $0x16c] ss:$16 sps:$4 sm:$0xff]  }
  0x46   :  { %419 = vmatpush1.bf16.msra.mxu1 %v1086_v14  ;;  %v1119_v42 = vld [vmem:[#allocation5 + $0x1a4] ss:$16 sps:$4 sm:$0xff]   ;;  %v1122_v43 = vld [vmem:[#allocation5 + $0x1a0] ss:$16 sps:$4 sm:$0xff]   ;;  %v1136_v2 = vld [vmem:[#allocation5 + $0x18c] ss:$16 sps:$4 sm:$0xff]   ;;  %v242_v14 = vlaneseq }
  0x47   :  { %420 = vmatprep.subr.bf16.mxu1 %v1087_v15  ;;  %v1123_v44 = vld [vmem:[#allocation5 + $0x1c4] ss:$16 sps:$4 sm:$0xff]   ;;  %v1126_v46 = vld [vmem:[#allocation5 + $0x1c0] ss:$16 sps:$4 sm:$0xff]   ;;  %v1137_v3 = vld [vmem:[#allocation5 + $0x1ac] ss:$16 sps:$4 sm:$0xff]  }
  0x48   :  { %986 = vmatpush3.bf16.msra.mxu0 %v1070_v10  ;;  %v1127_v47 = vld [vmem:[#allocation5 + $0x1e4] ss:$16 sps:$4 sm:$0xff]   ;;  %v1130_v49 = vld [vmem:[#allocation5 + $0x1e0] ss:$16 sps:$4 sm:$0xff]   ;;  %v1138_v4 = vld [vmem:[#allocation5 + $0x1cc] ss:$16 sps:$4 sm:$0xff]  }
  0x49   :  { %987 = vmatprep.subr.bf16.mxu0 %v1238_v0  ;;  %v1352_v50 = vld [vmem:[%s1400_s1] sm:$0xff]   ;;  %v1139_v5 = vld [vmem:[#allocation5 + $0x1ec] ss:$16 sps:$4 sm:$0xff]   ;;  %v1142_v8 = vld [vmem:[#allocation7 + $0x10] sm:$0xff]   ;;  %v243_v15 = vshrl.u32 %v242_v14, 7 }
  0x4a   :  { %421 = vmatpush1.bf16.msra.mxu1 %v1089_v17  ;;  %444 = vmatprep.mubr.bf16.mxu1 %v1352_v50  ;;  %v853_v51 = vld [vmem:[%s1402_s3] ss:$0 sm:$0xff]  ;;  %v1141_v7 = vld [vmem:[#allocation7 + $0x8] sm:$0xff]   ;;  %v1143_v9 = vld [vmem:[#allocation7 + $0x18] sm:$0xff]  }
  0x4b   :  { %422 = vmatprep.subr.bf16.mxu1 %v1090_v18  ;;  %v1140_v6 = vld [vmem:[#allocation7] sm:$0xff]   ;;  %v1145_v11 = vld [vmem:[#allocation7 + $0x28] sm:$0xff]   ;;  %v1146_v12 = vld [vmem:[#allocation7 + $0x30] sm:$0xff]  }
  0x4c   :  { %988 = vmatpush3.bf16.msra.mxu0 %v1071_v13  ;;  %v1144_v10 = vld [vmem:[#allocation7 + $0x20] sm:$0xff]   ;;  %v1147_v13 = vld [vmem:[#allocation7 + $0x38] sm:$0xff]  }
  0x4d   :  { %989 = vmatprep.subr.bf16.mxu0 %v1238_v0 }
  0x4e   :  { %423 = vmatpush1.bf16.msra.mxu1 %v1092_v21 }
  0x4f   :  { %424 = vmatprep.subr.bf16.mxu1 %v1093_v22 }
  0x50   :  { %990 = vmatpush3.bf16.msra.mxu0 %v1072_v16  ;;  %v244_v16 = vsub.s32 0, %v243_v15 }
  0x51   :  { %991 = vmatprep.subr.bf16.mxu0 %v1238_v0 }
  0x52   :  { %425 = vmatpush1.bf16.msra.mxu1 %v1095_v24 }
  0x53   :  { %426 = vmatprep.subr.bf16.mxu1 %v1096_v25 }
  0x54   :  { %992 = vmatpush3.bf16.msra.mxu0 %v1073_v19  ;;  %v240_v19 = vld [vmem:[%s1404_s5] sm:$0x3] }
  0x55   :  { %997 = vmatprep.subr.bf16.mxu0 %v1238_v0 }
  0x56   :  { %427 = vmatpush1.bf16.msra.mxu1 %v1098_v27 }
  0x57   :  { %994 = vmatmul.mubr.bf16.vlgmr.msra.gmra.mrb[0].mxu0 %v1074_v20  ;;  %428 = vmatprep.subr.bf16.mxu1 %v1099_v28 }
  0x58   :  { %998 = vmatpush3.bf16.msra.mxu0 %v1101_v23  ;;  %1013 = vmatprep.mubr.msk.bf16.mxu0 %vm1239_vm0, %v1238_v0 }
  0x59   :  { %999 = vmatprep.subr.bf16.mxu0 %v1238_v0 }
  0x5a   :  { %429 = vmatpush1.bf16.msra.mxu1 %v1102_v30 }
  0x5b   :  { %430 = vmatprep.subr.bf16.mxu1 %v1103_v31 }
  0x5c   :  { %1000 = vmatpush3.bf16.msra.mxu0 %v1105_v26  ;;  %v245_v26 = vrot.slane %v240_v19, %v244_v16 }
  0x5d   :  { %1001 = vmatprep.subr.bf16.mxu0 %v1238_v0 }
  0x5e   :  { %431 = vmatpush1.bf16.msra.mxu1 %v1106_v33 }
  0x5f   :  { %432 = vmatprep.subr.bf16.mxu1 %v1107_v34 }
  0x60   :  { %1002 = vmatpush3.bf16.msra.mxu0 %v1109_v29 }
  0x61   :  { %1003 = vmatprep.subr.bf16.mxu0 %v1238_v0 }
  0x62   :  { %433 = vmatpush1.bf16.msra.mxu1 %v1110_v36 }
  0x63   :  { %434 = vmatprep.subr.bf16.mxu1 %v1111_v37 }
  0x64   :  { %1004 = vmatpush3.bf16.msra.mxu0 %v1113_v32 }
  0x65   :  { %1005 = vmatprep.subr.bf16.mxu0 %v1238_v0 }
  0x66   :  { %435 = vmatpush1.bf16.msra.mxu1 %v1114_v39  ;;  %v905_v39 = vld [vmem:[%s1404_s5 + $0x3] ss:$0 sm:$0xff] }
  0x67   :  { %436 = vmatprep.subr.bf16.mxu1 %v1115_v40 }
  0x68   :  { %1006 = vmatpush3.bf16.msra.mxu0 %v1117_v35 }
  0x69   :  { %1007 = vmatprep.subr.bf16.mxu0 %v1238_v0 }
  0x6a   :  { %437 = vmatpush1.bf16.msra.mxu1 %v1118_v41  ;;  %v896_v41 = vld [vmem:[%s1404_s5 + $0x2] ss:$0 sm:$0xff] }
  0x6b   :  { %438 = vmatprep.subr.bf16.mxu1 %v1119_v42 }
  0x6c   :  { %1008 = vmatpush3.bf16.msra.mxu0 %v1121_v38 }
  0x6d   :  { %1009 = vmatprep.subr.bf16.mxu0 %v1238_v0 }
  0x6e   :  { %439 = vmatpush1.bf16.msra.mxu1 %v1122_v43 }
  0x6f   :  { %440 = vmatprep.subr.bf16.mxu1 %v1123_v44 }
  0x70   :  { %1010 = vmatpush3.bf16.msra.mxu0 %v1125_v45 }
  0x71   :  { %1011 = vmatprep.subr.bf16.mxu0 %v1238_v0 }
  0x72   :  { %441 = vmatpush1.bf16.msra.mxu1 %v1126_v46 }
  0x73   :  { %442 = vmatprep.subr.bf16.mxu1 %v1127_v47 }
  0x74   :  { %1012 = vmatpush3.bf16.msra.mxu0 %v1129_v48 }
  0x75   :  { %1017 = vmatprep.subr.bf16.mxu0 %v1238_v0 }
  0x76   :  { %443 = vmatpush1.bf16.msra.mxu1 %v1130_v49 }
  0x77   :  { %1037 = vmatprep.subr.bf16.mxu1 %v1238_v0 }
 0x12a   :  { %v188_v52 = vpop.f32.mrb[0].mxu0 }
 0x12b   :  { %v189_v53 = vadd.f32 %v853_v51, %v188_v52  ;;  %v995_v54 = vpop.f32.mrb[1].mxu0 }
 0x12c   :  { %v191_v55 = vpop.f32.mrb[2].mxu0 }
 0x12d   :  { %v192_v56 = vadd.f32 %v853_v51, %v191_v55  ;;  %v996_v57 = vpop.f32.mrb[3].mxu0  ;;  %v195_v58 = vmax.f32 %v189_v53, 0.0 }
 0x12f   :  { %v196_v59 = vmax.f32 %v192_v56, 0.0 }
 0x131   :  { %v197_v61 = vpack.c.bf16 %v196_v59, %v195_v58 }
 0x133   :  { %445 = vmatmul.mubr.bf16.vlgmr.msra.gmra.mrb[0].mxu1 %v197_v61  ;;  %1014 = vmatmul.mubr.bf16.vlgmr.msra.gmra.mrb[4].mxu0 %v197_v61 }
 0x134   :  { %1018 = vmatpush3.bf16.msra.mxu0 %v1132_v60  ;;  %1033 = vmatprep.mubr.msk.bf16.mxu0 %vm1239_vm0, %v1238_v0 }
 0x135   :  { %1019 = vmatprep.subr.bf16.mxu0 %v1238_v0  ;;  %1053 = vmatprep.mubr.msk.bf16.mxu1 %vm1239_vm0, %v1238_v0 }
 0x136   :  { %1038 = vmatpush3.bf16.msra.mxu1 %v1140_v6 }
 0x137   :  { %1039 = vmatprep.subr.bf16.mxu1 %v1238_v0 }
 0x138   :  { %1020 = vmatpush3.bf16.msra.mxu0 %v1133_v62  ;;  %v705_v62 = vunpack.c.l.bf16 %v1352_v50 }
 0x139   :  { %1021 = vmatprep.subr.bf16.mxu0 %v1238_v0 }
 0x13a   :  { %1040 = vmatpush3.bf16.msra.mxu1 %v1141_v7 }
 0x13b   :  { %1041 = vmatprep.subr.bf16.mxu1 %v1238_v0 }
 0x13c   :  { %1022 = vmatpush3.bf16.msra.mxu0 %v1134_v63 }
 0x13d   :  { %1023 = vmatprep.subr.bf16.mxu0 %v1238_v0 }
 0x13e   :  { %1042 = vmatpush3.bf16.msra.mxu1 %v1142_v8 }
 0x13f   :  { %1043 = vmatprep.subr.bf16.mxu1 %v1238_v0 }
 0x140   :  { %1024 = vmatpush3.bf16.msra.mxu0 %v1135_v1  ;;  %v706_v1 = vunpack.c.h.bf16 %v1352_v50 }
 0x141   :  { %1025 = vmatprep.subr.bf16.mxu0 %v1238_v0 }
 0x142   :  { %1044 = vmatpush3.bf16.msra.mxu1 %v1143_v9 }
 0x143   :  { %1045 = vmatprep.subr.bf16.mxu1 %v1238_v0 }
 0x144   :  { %1026 = vmatpush3.bf16.msra.mxu0 %v1136_v2 }
 0x145   :  { %1027 = vmatprep.subr.bf16.mxu0 %v1238_v0 }
 0x146   :  { %1046 = vmatpush3.bf16.msra.mxu1 %v1144_v10 }
 0x147   :  { %1047 = vmatprep.subr.bf16.mxu1 %v1238_v0 }
 0x148   :  { %1028 = vmatpush3.bf16.msra.mxu0 %v1137_v3 }
 0x149   :  { %1029 = vmatprep.subr.bf16.mxu0 %v1238_v0 }
 0x14a   :  { %1048 = vmatpush3.bf16.msra.mxu1 %v1145_v11 }
 0x14b   :  { %1049 = vmatprep.subr.bf16.mxu1 %v1238_v0 }
 0x14c   :  { %1030 = vmatpush3.bf16.msra.mxu0 %v1138_v4 }
 0x14d   :  { %1031 = vmatprep.subr.bf16.mxu0 %v1238_v0 }
 0x14e   :  { %1050 = vmatpush3.bf16.msra.mxu1 %v1146_v12 }
 0x14f   :  { %1051 = vmatprep.subr.bf16.mxu1 %v1238_v0  ;;  %v248_v0 = vsub.s32 1, %v243_v15 }
 0x150   :  { %1032 = vmatpush3.bf16.msra.mxu0 %v1139_v5 }
 0x151   :  { %v249_v31 = vrot.slane %v240_v19, %v248_v0 }
 0x152   :  { %1052 = vmatpush3.bf16.msra.mxu1 %v1147_v13 }
 0x153   :  { %1034 = vmatmul.mubr.bf16.vlgmr.msra.gmra.mrb[8].mxu0 %v1352_v50  ;;  %v914_v50 = vld [vmem:[%s1406_s7] ss:$0 sm:$0xff] }
 0x206   :  { %v446_v17 = vpop.f32.mrb[0].mxu1  ;;  %v576_v18 = vpop.f32.mrb[4].mxu0 }
 0x207   :  { %v448_v20 = vpop.f32.mrb[1].mxu1  ;;  %v1015_v21 = vpop.f32.mrb[5].mxu0  ;;  %v447_v27 = vadd.f32 %v446_v17, %v245_v26  ;;  %v577_v47 = vadd.f32 %v896_v41, %v576_v18 }
 0x208   :  { %v450_v22 = vpop.f32.mrb[2].mxu1  ;;  %v579_v23 = vpop.f32.mrb[6].mxu0  ;;  %v449_v32 = vadd.f32 %v448_v20, %v249_v31 }
 0x209   :  { %v452_v24 = vpop.f32.mrb[3].mxu1  ;;  %v1016_v25 = vpop.f32.mrb[7].mxu0  ;;  %v451_v28 = vadd.f32 %v450_v22, %v245_v26  ;;  %v455_v29 = vmul.f32 0.5, %v447_v27  ;;  %v580_v54 = vadd.f32 %v896_v41, %v579_v23 }
 0x20a   :  { %v453_v33 = vadd.f32 %v452_v24, %v249_v31  ;;  %v463_v34 = vmul.f32 0.5, %v449_v32 }
 0x20b   :  { %v456_v30 = vmul.f32 0.5, %v451_v28  ;;  %1149 = vtanh.f32 %v455_v29 }
 0x20c   :  { %v464_v35 = vmul.f32 0.5, %v453_v33 }
 0x20d   :  { %1151 = vtanh.f32 %v456_v30 }
 0x20e   :  { %1153 = vtanh.f32 %v463_v34 }
 0x20f   :  { %1155 = vtanh.f32 %v464_v35 }
 0x215   :  { %v1150_v36 = vpop.eup %1149 }
 0x216   :  { %v459_v38 = vadd.f32 1.0, %v1150_v36 }
 0x217   :  { %v1152_v37 = vpop.eup %1151 }
 0x218   :  { %v460_v40 = vadd.f32 1.0, %v1152_v37  ;;  %v461_v43 = vmul.f32 0.5, %v459_v38  ;;  %v1154_v53 = vpop.eup %1153 }
 0x219   :  { %v1156_v57 = vpop.eup %1155  ;;  %v467_v59 = vadd.f32 1.0, %v1154_v53 }
 0x21a   :  { %v462_v49 = vmul.f32 0.5, %v460_v40  ;;  %v468_v60 = vadd.f32 1.0, %v1156_v57 }
 0x21b   :  { %v469_v61 = vmul.f32 0.5, %v467_v59 }
 0x21c   :  { %v470_v63 = vmul.f32 0.5, %v468_v60 }
 0x21d   :  { %v701_v2 = vsub.f32 1.0, %v469_v61  ;;  %v707_v4 = vmul.f32 %v705_v62, %v469_v61 }
 0x21e   :  { %v702_v5 = vsub.f32 1.0, %v470_v63  ;;  %v708_v8 = vmul.f32 %v706_v1, %v470_v63 }
 0x226   :  { %v688_v42 = vpop.f32.mrb[8].mxu0 }
 0x227   :  { %v689_v44 = vadd.f32 %v905_v39, %v688_v42  ;;  %v1035_v45 = vpop.f32.mrb[9].mxu0 }
 0x228   :  { %v691_v46 = vpop.f32.mrb[10].mxu0 }
 0x229   :  { %v695_v48 = vmul.f32 %v689_v44, %v461_v43  ;;  %v692_v51 = vadd.f32 %v905_v39, %v691_v46  ;;  %v1036_v52 = vpop.f32.mrb[11].mxu0 }
 0x22b   :  { %v697_v55 = vadd.f32 %v695_v48, %v577_v47  ;;  %v696_v56 = vmul.f32 %v692_v51, %v462_v49 }
 0x22d   :  { %1157 = vtanh.f32 %v697_v55  ;;  %v698_v58 = vadd.f32 %v696_v56, %v580_v54 }
 0x22f   :  { %1159 = vtanh.f32 %v698_v58 }
 0x237   :  { %v1158_v3 = vpop.eup %1157 }
 0x238   :  { %v703_v6 = vmul.f32 %v1158_v3, %v701_v2 }
 0x239   :  { %v1160_v7 = vpop.eup %1159 }
 0x23a   :  { %v704_v9 = vmul.f32 %v1160_v7, %v702_v5  ;;  %v709_v10 = vadd.f32 %v707_v4, %v703_v6 }
 0x23c   :  { %v710_v11 = vadd.f32 %v708_v8, %v704_v9 }
 0x23e   :  { %v711_v12 = vpack.c.bf16 %v710_v11, %v709_v10 }
 0x240   :  { %1054 = vmatmul.mubr.bf16.vlgmr.msra.gmra.mrb[4].mxu1 %v711_v12  ;;  %940 = vst [vmem:[%s1408_s9] sm:$0xff] %v711_v12  }
 0x313   :  { %v817_v13 = vpop.f32.mrb[4].mxu1 }
 0x314   :  { %v1055_v14 = vpop.f32.mrb[5].mxu1  ;;  %v818_v16 = vadd.f32 %v914_v50, %v817_v13 }
 0x315   :  { %v820_v15 = vpop.f32.mrb[6].mxu1 }
 0x316   :  { %v821_v17 = vadd.f32 %v914_v50, %v820_v15  ;;  %v1056_v18 = vpop.f32.mrb[7].mxu1 }
 0x318   :  { %v934_v19 = vpack.c.bf16 %v821_v17, %v818_v16 }
 0x31a   :  { %935 = vst [vmem:[%s1407_s8] sm:$0xff] %v934_v19  }
 0x31b   :  { %851 = vsyncpa [#allocation4], 1 }
 0x31c   :  { %852 = vsyncpa [#allocation6], 1 }

</bundles_post_ra>
